<compile_context>
chip_gen: v5e
topology: v5e:2x2
jax: 0.10.0
libtpu: 0.0.40
codegen_flags: <defaults>
</compile_context>

<pallas_src>
import jax
import jax.numpy as jnp
from jax.experimental import pallas as pl
from jax.experimental.pallas import tpu as pltpu

_LANE = 128


def _round_up(x, m):
    return ((x + m - 1) // m) * m


def _pad_cols(a, target):
    pad = target - a.shape[-1]
    return a if pad == 0 else jnp.pad(a, ((0, 0), (0, pad)))


def _pad_rows(a, target):
    pad = target - a.shape[0]
    return a if pad == 0 else jnp.pad(a, ((0, pad), (0, 0)))


def _choose_tile_m(batch, requested=1024, min_steps=4):
    """Batch tile: as large as requested, but keep >= min_steps grid steps
    (2 per v7x TensorCore) so the software pipeline can overlap DMA/compute."""
    t = max(16, min(requested, pl.cdiv(batch, min_steps)))
    t = _round_up(t, 16)                       # sublane/bf16-friendly
    return min(t, _round_up(batch, 16))


# ----------------------------- Pallas kernel ------------------------------ #
def _belief_update_kernel(ctx_ref, sel_ref,
                          w0c_ref, w0f_ref, b0_ref,
                          w1_ref, b1_ref,
                          w2_ref, b2_ref,
                          o_ref):
    """One batch tile of the full MLP (3 matmuls + bias + ReLU, all fused).

    Layer 0 is split (ctx @ W0c + sel @ W0f) so torch.cat never hits HBM.
    Layers 1/2 run the MXU with bf16 operands and f32 accumulation; all
    bias-adds / ReLUs stay in f32 (safe on v5e, cheap on v6e/v7x).
    """
    # TODO(synk): exploit the one-hot selectors via a scalar-prefetched row
    # gather of W0f instead of the (tile_m, F) @ (F, H0) matmul.
    h = jnp.dot(ctx_ref[...], w0c_ref[...], preferred_element_type=jnp.float32)
    h = h + jnp.dot(sel_ref[...], w0f_ref[...],
                    preferred_element_type=jnp.float32)
    h = jnp.maximum(h + b0_ref[...], 0.0)

    h = jnp.dot(h.astype(jnp.bfloat16), w1_ref[...],
                preferred_element_type=jnp.float32) + b1_ref[...]
    h = jnp.maximum(h, 0.0)

    h = jnp.dot(h.astype(jnp.bfloat16), w2_ref[...],
                preferred_element_type=jnp.float32) + b2_ref[...]
    h = jnp.maximum(h, 0.0)            # final layer is also ReLU'd (matches module)

    o_ref[...] = h.astype(o_ref.dtype)


# --------------------------- parameter prep -------------------------------- #
def prepare_params(params, context_size, use_context=True):
    """One-time lane padding / dtype prep of the Linear stack.

    Zero-padded weight columns AND zero biases keep padded lanes exactly 0
    under ReLU, so padded hidden lanes contribute exactly 0 downstream.
    """
    (w0, b0), (w1, b1), (w2, b2) = params
    if use_context:
        C = context_size
        w0c, w0f = w0[:C], w0[C:]
    else:
        # Dummy all-zero context keeps a single kernel path; contributes 0.
        C = 8
        w0c = jnp.zeros((C, w0.shape[1]), dtype=w0.dtype)
        w0f = w0

    h0p = _round_up(w0.shape[1], _LANE)
    h1p = _round_up(w1.shape[1], _LANE)
    out_dim = int(w2.shape[1])

    return dict(
        C=int(C),
        F=int(w0f.shape[0]),
        out_dim=out_dim,
        w0c=_pad_cols(w0c, h0p).astype(jnp.float32),
        w0f=_pad_cols(w0f, h0p).astype(jnp.float32),
        b0=_pad_cols(b0, h0p).astype(jnp.float32),
        w1=_pad_cols(_pad_rows(w1, h0p), h1p).astype(jnp.bfloat16),
        b1=_pad_cols(b1, h1p).astype(jnp.float32),
        w2=_pad_rows(w2, h1p).astype(jnp.bfloat16),   # narrow output: no col pad
        b2=b2.astype(jnp.float32),
    )


# ------------------------------- wrapper ----------------------------------- #
def belief_update_forward(contexts, function_selectors, prepared,
                          *, use_context=True, tile_m=1024):
    """Pallas forward. contexts: [B, C] (ignored if not use_context),
    function_selectors: [B, F] one-hot rows. Returns [B, object_size] f32."""
    B, F = function_selectors.shape
    C = prepared["C"]
    out_dim = prepared["out_dim"]
    h0p = prepared["w0c"].shape[1]
    h1p = prepared["w1"].shape[1]

    ctx = contexts if use_context else jnp.zeros((B, C), jnp.float32)
    sel = function_selectors

    tm = _choose_tile_m(B, tile_m)
    grid = (pl.cdiv(B, tm),)          # last partial block is clipped on write
    bcast = lambda i: (0, 0)          # weights/biases: same block every step

    out = pl.pallas_call(
        _belief_update_kernel,
        out_shape=jax.ShapeDtypeStruct((B, out_dim), jnp.float32),
        grid_spec=pltpu.PrefetchScalarGridSpec(
            num_scalar_prefetch=0,
            grid=grid,
            in_specs=[
                pl.BlockSpec((tm, C), lambda i: (i, 0)),     # contexts tile
                pl.BlockSpec((tm, F), lambda i: (i, 0)),     # selectors tile
                pl.BlockSpec((C, h0p), bcast),               # W0[:C]   (f32)
                pl.BlockSpec((F, h0p), bcast),               # W0[C:]   (f32)
                pl.BlockSpec((1, h0p), bcast),               # b0       (f32)
                pl.BlockSpec((h0p, h1p), bcast),             # W1       (bf16)
                pl.BlockSpec((1, h1p), bcast),               # b1       (f32)
                pl.BlockSpec((h1p, out_dim), bcast),         # W2       (bf16)
                pl.BlockSpec((1, out_dim), bcast),           # b2       (f32)
            ],
            out_specs=pl.BlockSpec((tm, out_dim), lambda i: (i, 0)),
        ),
        compiler_params=pltpu.CompilerParams(
            dimension_semantics=("parallel",)),
    )(ctx, sel, prepared["w0c"], prepared["w0f"], prepared["b0"],
      prepared["w1"], prepared["b1"], prepared["w2"], prepared["b2"])
    return out   # no wrapper-side slicing / padding passes


# --------------------------- parameter init -------------------------------- #
def init_params(key, context_size, num_functions, object_size, hidden_sizes,
                use_context=True):
    """Deterministic init of the Linear stack (shapes match the nn.Module)."""
    input_size = (context_size + num_functions) if use_context else num_functions
    dims = [input_size] + list(hidden_sizes) + [object_size]
    params = []
    for i in range(len(dims) - 1):
        key, kw, kb = jax.random.split(key, 3)
        bound = 1.0 / jnp.sqrt(dims[i])
        w = jax.random.uniform(kw, (dims[i], dims[i + 1]),
                               minval=-bound, maxval=bound, dtype=jnp.float32)
        b = jax.random.uniform(kb, (1, dims[i + 1]),
                               minval=-bound, maxval=bound, dtype=jnp.float32)
        params.append((w, b))
    return params


def reference_forward(contexts, function_selectors, params, use_context=True):
    """Pure-JAX f32 reference matching the PyTorch forward semantics."""
    x = (jnp.concatenate((contexts, function_selectors), axis=-1)
         if use_context else function_selectors)
    for (w, b) in params:
        x = jnp.maximum(
            jnp.dot(x, w, precision=jax.lax.Precision.HIGHEST) + b, 0.0)
    return x


# --------------------------------- main ------------------------------------ #
if __name__ == "__main__":
    # Small, module-consistent shapes; batch gives 4 grid steps (2 per v7x TC).
    context_size = 16
    num_functions = 8
    object_size = 16
    hidden_sizes = (32, 32)
    batch = 1024
    use_context = True

    key = jax.random.PRNGKey(0)
    k_params, k_ctx, k_sel = jax.random.split(key, 3)

    params = init_params(k_params, context_size, num_functions, object_size,
                         hidden_sizes, use_context=use_context)
    prepared = prepare_params(params, context_size, use_context=use_context)

    contexts = jax.random.normal(k_ctx, (batch, context_size), dtype=jnp.float32)
    fn_ids = jax.random.randint(k_sel, (batch,), 0, num_functions)
    function_selectors = jax.nn.one_hot(fn_ids, num_functions, dtype=jnp.float32)

    out = belief_update_forward(contexts, function_selectors, prepared,
                                use_context=use_context, tile_m=1024)
    out = jax.block_until_ready(out)

    ref = reference_forward(contexts, function_selectors, params,
                            use_context=use_context)
    assert out.shape == (batch, object_size)
    # Layers 1/2 use bf16 MXU operands (f32 accumulation), so compare against
    # the full-f32 reference with a bf16-appropriate tolerance.
    assert jnp.allclose(out, ref, atol=3e-2, rtol=3e-2), "mismatch vs reference"

    print("KERNEL_OK")
</pallas_src>

<mosaic_0001>
module attributes {stable_mosaic.version = 11 : i64} {
  func.func @_belief_update_kernel(%arg0: i32, %arg1: memref<256x16xf32, #tpu.memory_space<vmem>>, %arg2: memref<256x8xf32, #tpu.memory_space<vmem>>, %arg3: memref<16x128xf32, #tpu.memory_space<vmem>>, %arg4: memref<8x128xf32, #tpu.memory_space<vmem>>, %arg5: memref<1x128xf32, #tpu.memory_space<vmem>>, %arg6: memref<128x128xbf16, #tpu.memory_space<vmem>>, %arg7: memref<1x128xf32, #tpu.memory_space<vmem>>, %arg8: memref<128x16xbf16, #tpu.memory_space<vmem>>, %arg9: memref<1x16xf32, #tpu.memory_space<vmem>>, %arg10: memref<256x16xf32, #tpu.memory_space<vmem>>) attributes {dimension_semantics = [#tpu.dimension_semantics<parallel>], iteration_bounds = array<i64: 4>, scalar_prefetch = 0 : i64, scratch_operands = 0 : i64, tpu.core_type = #tpu.core_type<tc>, window_params = [{transform_indices = @transform_0, window_bounds = array<i64: 256, 16>}, {transform_indices = @transform_1, window_bounds = array<i64: 256, 8>}, {pipeline_mode = #tpu.pipeline_mode<synchronous>, transform_indices = @transform_2, window_bounds = array<i64: 16, 128>}, {pipeline_mode = #tpu.pipeline_mode<synchronous>, transform_indices = @transform_3, window_bounds = array<i64: 8, 128>}, {pipeline_mode = #tpu.pipeline_mode<synchronous>, transform_indices = @transform_4, window_bounds = array<i64: 1, 128>}, {pipeline_mode = #tpu.pipeline_mode<synchronous>, transform_indices = @transform_5, window_bounds = array<i64: 128, 128>}, {pipeline_mode = #tpu.pipeline_mode<synchronous>, transform_indices = @transform_6, window_bounds = array<i64: 1, 128>}, {pipeline_mode = #tpu.pipeline_mode<synchronous>, transform_indices = @transform_7, window_bounds = array<i64: 128, 16>}, {pipeline_mode = #tpu.pipeline_mode<synchronous>, transform_indices = @transform_8, window_bounds = array<i64: 1, 16>}, {transform_indices = @transform_9, window_bounds = array<i64: 256, 16>}]} {
    %c0 = arith.constant 0 : index
    %c0_0 = arith.constant 0 : index
    %0 = vector.load %arg1[%c0, %c0_0] : memref<256x16xf32, #tpu.memory_space<vmem>>, vector<256x16xf32>
    %c0_1 = arith.constant 0 : index
    %c0_2 = arith.constant 0 : index
    %1 = vector.load %arg3[%c0_1, %c0_2] : memref<16x128xf32, #tpu.memory_space<vmem>>, vector<16x128xf32>
    %cst = arith.constant dense<0.000000e+00> : vector<256x128xf32>
    %2 = tpu.matmul %0, %1, %cst {dimension_numbers = #tpu.dot_dimension_numbers<[1], [0], [0], [1], [0, 0, 1, 1], [], []>} : vector<256x16xf32>, vector<16x128xf32>, vector<256x128xf32> -> vector<256x128xf32>
    %c0_3 = arith.constant 0 : index
    %c0_4 = arith.constant 0 : index
    %3 = vector.load %arg2[%c0_3, %c0_4] : memref<256x8xf32, #tpu.memory_space<vmem>>, vector<256x8xf32>
    %c0_5 = arith.constant 0 : index
    %c0_6 = arith.constant 0 : index
    %4 = vector.load %arg4[%c0_5, %c0_6] : memref<8x128xf32, #tpu.memory_space<vmem>>, vector<8x128xf32>
    %cst_7 = arith.constant dense<0.000000e+00> : vector<256x128xf32>
    %5 = tpu.matmul %3, %4, %cst_7 {dimension_numbers = #tpu.dot_dimension_numbers<[1], [0], [0], [1], [0, 0, 1, 1], [], []>} : vector<256x8xf32>, vector<8x128xf32>, vector<256x128xf32> -> vector<256x128xf32>
    %6 = arith.addf %2, %5 : vector<256x128xf32>
    %c0_8 = arith.constant 0 : index
    %c0_9 = arith.constant 0 : index
    %7 = vector.load %arg5[%c0_8, %c0_9] : memref<1x128xf32, #tpu.memory_space<vmem>>, vector<1x128xf32>
    %8 = vector.broadcast %7 : vector<1x128xf32> to vector<256x128xf32>
    %9 = arith.addf %6, %8 : vector<256x128xf32>
    %cst_10 = arith.constant 0.000000e+00 : f32
    %10 = vector.broadcast %cst_10 : f32 to vector<256x128xf32>
    %11 = arith.maximumf %9, %10 : vector<256x128xf32>
    %12 = arith.truncf %11 : vector<256x128xf32> to vector<256x128xbf16>
    %c0_11 = arith.constant 0 : index
    %c0_12 = arith.constant 0 : index
    %13 = vector.load %arg6[%c0_11, %c0_12] : memref<128x128xbf16, #tpu.memory_space<vmem>>, vector<128x128xbf16>
    %cst_13 = arith.constant dense<0.000000e+00> : vector<256x128xf32>
    %14 = tpu.matmul %12, %13, %cst_13 {dimension_numbers = #tpu.dot_dimension_numbers<[1], [0], [0], [1], [0, 0, 1, 1], [], []>} : vector<256x128xbf16>, vector<128x128xbf16>, vector<256x128xf32> -> vector<256x128xf32>
    %c0_14 = arith.constant 0 : index
    %c0_15 = arith.constant 0 : index
    %15 = vector.load %arg7[%c0_14, %c0_15] : memref<1x128xf32, #tpu.memory_space<vmem>>, vector<1x128xf32>
    %16 = vector.broadcast %15 : vector<1x128xf32> to vector<256x128xf32>
    %17 = arith.addf %14, %16 : vector<256x128xf32>
    %cst_16 = arith.constant 0.000000e+00 : f32
    %18 = vector.broadcast %cst_16 : f32 to vector<256x128xf32>
    %19 = arith.maximumf %17, %18 : vector<256x128xf32>
    %20 = arith.truncf %19 : vector<256x128xf32> to vector<256x128xbf16>
    %c0_17 = arith.constant 0 : index
    %c0_18 = arith.constant 0 : index
    %21 = vector.load %arg8[%c0_17, %c0_18] : memref<128x16xbf16, #tpu.memory_space<vmem>>, vector<128x16xbf16>
    %cst_19 = arith.constant dense<0.000000e+00> : vector<256x16xf32>
    %22 = tpu.matmul %20, %21, %cst_19 {dimension_numbers = #tpu.dot_dimension_numbers<[1], [0], [0], [1], [0, 0, 1, 1], [], []>} : vector<256x128xbf16>, vector<128x16xbf16>, vector<256x16xf32> -> vector<256x16xf32>
    %c0_20 = arith.constant 0 : index
    %c0_21 = arith.constant 0 : index
    %23 = vector.load %arg9[%c0_20, %c0_21] : memref<1x16xf32, #tpu.memory_space<vmem>>, vector<1x16xf32>
    %24 = vector.broadcast %23 : vector<1x16xf32> to vector<256x16xf32>
    %25 = arith.addf %22, %24 : vector<256x16xf32>
    %cst_22 = arith.constant 0.000000e+00 : f32
    %26 = vector.broadcast %cst_22 : f32 to vector<256x16xf32>
    %27 = arith.maximumf %25, %26 : vector<256x16xf32>
    %c0_23 = arith.constant 0 : index
    %c0_24 = arith.constant 0 : index
    %28 = vector.load %arg10[%c0_23, %c0_24] : memref<256x16xf32, #tpu.memory_space<vmem>>, vector<256x16xf32>
    tpu.vector_store %arg10[%c0_23, %c0_24], %27 {strides = array<i32>} : memref<256x16xf32, #tpu.memory_space<vmem>>, vector<256x16xf32>,
    return
  }
  func.func @transform_0(%arg0: i32) -> (i32, i32) {
    %c0_i32 = arith.constant 0 : i32
    %c0_i32_0 = arith.constant 0 : i32
    return %arg0, %c0_i32 : i32, i32
  }
  func.func @transform_1(%arg0: i32) -> (i32, i32) {
    %c0_i32 = arith.constant 0 : i32
    %c0_i32_0 = arith.constant 0 : i32
    return %arg0, %c0_i32 : i32, i32
  }
  func.func @transform_2(%arg0: i32) -> (i32, i32) {
    %c0_i32 = arith.constant 0 : i32
    %c0_i32_0 = arith.constant 0 : i32
    %c0_i32_1 = arith.constant 0 : i32
    return %c0_i32, %c0_i32_0 : i32, i32
  }
  func.func @transform_3(%arg0: i32) -> (i32, i32) {
    %c0_i32 = arith.constant 0 : i32
    %c0_i32_0 = arith.constant 0 : i32
    %c0_i32_1 = arith.constant 0 : i32
    return %c0_i32, %c0_i32_0 : i32, i32
  }
  func.func @transform_4(%arg0: i32) -> (i32, i32) {
    %c0_i32 = arith.constant 0 : i32
    %c0_i32_0 = arith.constant 0 : i32
    %c0_i32_1 = arith.constant 0 : i32
    return %c0_i32, %c0_i32_0 : i32, i32
  }
  func.func @transform_5(%arg0: i32) -> (i32, i32) {
    %c0_i32 = arith.constant 0 : i32
    %c0_i32_0 = arith.constant 0 : i32
    %c0_i32_1 = arith.constant 0 : i32
    return %c0_i32, %c0_i32_0 : i32, i32
  }
  func.func @transform_6(%arg0: i32) -> (i32, i32) {
    %c0_i32 = arith.constant 0 : i32
    %c0_i32_0 = arith.constant 0 : i32
    %c0_i32_1 = arith.constant 0 : i32
    return %c0_i32, %c0_i32_0 : i32, i32
  }
  func.func @transform_7(%arg0: i32) -> (i32, i32) {
    %c0_i32 = arith.constant 0 : i32
    %c0_i32_0 = arith.constant 0 : i32
    %c0_i32_1 = arith.constant 0 : i32
    return %c0_i32, %c0_i32_0 : i32, i32
  }
  func.func @transform_8(%arg0: i32) -> (i32, i32) {
    %c0_i32 = arith.constant 0 : i32
    %c0_i32_0 = arith.constant 0 : i32
    %c0_i32_1 = arith.constant 0 : i32
    return %c0_i32, %c0_i32_0 : i32, i32
  }
  func.func @transform_9(%arg0: i32) -> (i32, i32) {
    %c0_i32 = arith.constant 0 : i32
    %c0_i32_0 = arith.constant 0 : i32
    return %arg0, %c0_i32 : i32, i32
  }
}

</mosaic_0001>

<bundles_post_ra>
// kernel: tpu_custom_call.1
= control target key start
LH: loop header
LB: loop body
LE: loop exit
PB: predicated region body
PF: predicated region fallthrough
CT: control target
= control target key end

     0   :  { %s1649_s30 = smov 0   ;;  %s2040_s0 = inlined_call_operand.vmem [shape: f32[1024,16], index: 0, kind: input, shape index: {}]   ;;  %s2041_s1 = inlined_call_operand.vmem [shape: f32[1024,8], index: 1, kind: input, shape index: {}]   ;;  %s2042_s2 = inlined_call_operand.vmem [shape: f32[16,128], index: 2, kind: input, shape index: {}]   ;;  %s2043_s3 = inlined_call_operand.vmem [shape: f32[8,128], index: 3, kind: input, shape index: {}]   ;;  %s2044_s4 = inlined_call_operand.vmem [shape: f32[1,128], index: 4, kind: input, shape index: {}]   ;;  %s2045_s5 = inlined_call_operand.vmem [shape: bf16[128,128], index: 5, kind: input, shape index: {}]   ;;  %s2046_s6 = inlined_call_operand.vmem [shape: f32[1,128], index: 6, kind: input, shape index: {}]   ;;  %s2047_s7 = inlined_call_operand.vmem [shape: bf16[128,16], index: 7, kind: input, shape index: {}]   ;;  %s2048_s8 = inlined_call_operand.vmem [shape: f32[1,16], index: 8, kind: input, shape index: {}]   ;;  %s2049_s9 = inlined_call_operand.vmem [shape: f32[1024,16], index: 9, kind: output, shape index: {}]  }
   0x1 LB: > { %s1423_s10 = sadd.s32 4294967295, %s1597_s30   ;;  %p1427_p0 = scmp.ge.s32.totalorder %s1597_s30, 1  ;;  %s1597_s30 = sphi %s1649_s30, %s19_s30  }
   0x2   : > { %p299_p1 = scmp.lt.s32.totalorder %s1597_s30, 5 }
   0x4   : > { %p300_p2 = pnand %p1427_p0, %p299_p1 }
   0x5   : > { %s1428_s17 = sshll.u32 (!%p300_p2), %s1423_s10, 5 }
   0x6   : > { %303 = sbr.rel (%p300_p2) target bundleno = 689 (0x2b1), region = 56  ;;  %p341_p3 = scmp.lt.s32.totalorder (!%p300_p2), %s1428_s17, 127 }
   0xb   : > { %v391_v0 = vld [vmem:[%s2042_s2 + $0x8] sm:$0xff]  ;;  %v424_v1 = vld [vmem:[%s2043_s3] sm:$0xff]  ;;  %s2051_s17 = smov (!%p341_p3, %s1428_s17), 127  ;;  %vm425_vm0 = vcmask 64512   ;;  %vm635_vm1 = vcmask 130048   ;;  %v1571_v23 = vld [vmem:[%s2045_s5 + $0x38] sm:$0xff] }
   0xc   : > { %v390_v2 = vld [vmem:[%s2042_s2] sm:$0xff]  ;;  %746 = vmatpush.msra.mxu1 %v391_v0  ;;  %537 = vmatpush.msra.mxu0 %v424_v1  ;;  %s1666_s18 = sshll.u32 %s2051_s17, 3  ;;  %v1570_v26 = vld [vmem:[%s2045_s5 + $0x30] sm:$0xff]  ;;  %v1569_v27 = vld [vmem:[%s2045_s5 + $0x28] sm:$0xff] }
   0xd   : > { %s1672_s21 = scalar_lea.vmem %s2041_s1, %s1666_s18  ;;  %s1678_s24 = scalar_lea.vmem %s2040_s0, %s1666_s18  ;;  %997 = vmatpush.bf16.msra.mxu2 %v1571_v23  ;;  %v1568_v30 = vld [vmem:[%s2045_s5 + $0x20] sm:$0xff]  ;;  %v1567_v33 = vld [vmem:[%s2045_s5 + $0x18] sm:$0xff]  ;;  %v1566_v34 = vld [vmem:[%s2045_s5 + $0x10] sm:$0xff] }
   0xe   : > { %747 = vmatpush.msra.mxu1 %v390_v2  ;;  %v392_v3 = vld [vmem:[%s1672_s21] sm:$0xff]  ;;  %v393_v5 = vld [vmem:[%s1672_s21 + $0x8] sm:$0xff]  ;;  %v394_v7 = vld [vmem:[%s1672_s21 + $0x10] sm:$0xff]  ;;  %s1926_s29 = scalar_lea.vmem %s2049_s9, %s1666_s18 }
   0xf   : > { %v358_v4 = vld [vmem:[%s1678_s24] sm:$0xff]  ;;  %1434 = vmatmul.msk.f32.vlgmr.msra.gmra.mxu0 %vm425_vm0, %v392_v3  ;;  %v359_v6 = vld [vmem:[%s1678_s24 + $0x8] sm:$0xff]  ;;  %v360_v8 = vld [vmem:[%s1678_s24 + $0x10] sm:$0xff] }
  0x10   : > { %1466 = vmatmul.msk.f32.vlgmr.msra.gmra.mxu1 %vm635_vm1, %v358_v4  ;;  %v395_v9 = vld [vmem:[%s1672_s21 + $0x18] sm:$0xff]  ;;  %v396_v11 = vld [vmem:[%s1672_s21 + $0x20] sm:$0xff]  ;;  %v397_v13 = vld [vmem:[%s1672_s21 + $0x28] sm:$0xff] }
  0x11   : > { %v361_v10 = vld [vmem:[%s1678_s24 + $0x18] sm:$0xff]  ;;  %v362_v12 = vld [vmem:[%s1678_s24 + $0x20] sm:$0xff]  ;;  %v363_v14 = vld [vmem:[%s1678_s24 + $0x28] sm:$0xff]  ;;  %998 = vmatpush.bf16.msra.mxu2 %v1570_v26 }
  0x12   : > { %v398_v15 = vld [vmem:[%s1672_s21 + $0x30] sm:$0xff]  ;;  %v399_v17 = vld [vmem:[%s1672_s21 + $0x38] sm:$0xff]  ;;  %v400_v19 = vld [vmem:[%s1672_s21 + $0x40] sm:$0xff] }
  0x13   : > { %v364_v16 = vld [vmem:[%s1678_s24 + $0x30] sm:$0xff]  ;;  %v365_v18 = vld [vmem:[%s1678_s24 + $0x38] sm:$0xff]  ;;  %v366_v20 = vld [vmem:[%s1678_s24 + $0x40] sm:$0xff] }
  0x14   : > { %v401_v21 = vld [vmem:[%s1672_s21 + $0x48] sm:$0xff]  ;;  %v402_v24 = vld [vmem:[%s1672_s21 + $0x50] sm:$0xff]  ;;  %v403_v28 = vld [vmem:[%s1672_s21 + $0x58] sm:$0xff] }
  0x15   : > { %v367_v22 = vld [vmem:[%s1678_s24 + $0x48] sm:$0xff]  ;;  %v368_v25 = vld [vmem:[%s1678_s24 + $0x50] sm:$0xff]  ;;  %v369_v29 = vld [vmem:[%s1678_s24 + $0x58] sm:$0xff]  ;;  %999 = vmatpush.bf16.msra.mxu2 %v1569_v27 }
  0x16   : > { %v404_v31 = vld [vmem:[%s1672_s21 + $0x60] sm:$0xff]  ;;  %v405_v35 = vld [vmem:[%s1672_s21 + $0x68] sm:$0xff]  ;;  %v406_v39 = vld [vmem:[%s1672_s21 + $0x70] sm:$0xff] }
  0x17   : > { %1435 = vmatmul.msk.f32.gmra.mxu0 %vm425_vm0, %v393_v5  ;;  %v370_v32 = vld [vmem:[%s1678_s24 + $0x60] sm:$0xff]  ;;  %v371_v36 = vld [vmem:[%s1678_s24 + $0x68] sm:$0xff]  ;;  %v372_v40 = vld [vmem:[%s1678_s24 + $0x70] sm:$0xff] }
  0x18   : > { %1467 = vmatmul.msk.f32.gmra.mxu1 %vm635_vm1, %v359_v6  ;;  %v1565_v37 = vld [vmem:[%s2045_s5 + $0x8] sm:$0xff]  ;;  %v1564_v38 = vld [vmem:[%s2045_s5] sm:$0xff]  ;;  %v407_v41 = vld [vmem:[%s1672_s21 + $0x78] sm:$0xff] }
  0x19   : > { %1000 = vmatpush.bf16.msra.mxu2 %v1568_v30  ;;  %v373_v42 = vld [vmem:[%s1678_s24 + $0x78] sm:$0xff]  ;;  %v408_v45 = vld [vmem:[%s1672_s21 + $0x80] sm:$0xff]  ;;  %v409_v51 = vld [vmem:[%s1672_s21 + $0x88] sm:$0xff] }
  0x1a   : > { %v374_v46 = vld [vmem:[%s1678_s24 + $0x80] sm:$0xff]  ;;  %v375_v52 = vld [vmem:[%s1678_s24 + $0x88] sm:$0xff]  ;;  %v410_v61 = vld [vmem:[%s1672_s21 + $0x90] sm:$0xff] }
  0x1b   : > { %v1775_v48 = vld [vmem:[%s2044_s4] ss:$0 sm:$0xff]  ;;  %v376_v62 = vld [vmem:[%s1678_s24 + $0x90] sm:$0xff]  ;;  %v411_v2 = vld [vmem:[%s1672_s21 + $0x98] sm:$0xff] }
  0x1c   : > { %v377_v3 = vld [vmem:[%s1678_s24 + $0x98] sm:$0xff]  ;;  %v414_v27 = vld [vmem:[%s1672_s21 + $0xb0] sm:$0xff] }
  0x1d   : > { %1001 = vmatpush.bf16.msra.mxu2 %v1567_v33  ;;  %v381_v33 = vld [vmem:[%s1678_s24 + $0xb8] sm:$0xff] }
  0x1f   : > { %1436 = vmatmul.msk.f32.gmra.mxu0 %vm425_vm0, %v394_v7 }
  0x20   : > { %1468 = vmatmul.msk.f32.gmra.mxu1 %vm635_vm1, %v360_v8 }
  0x21   : > { %1002 = vmatpush.bf16.msra.mxu2 %v1566_v34 }
  0x25   : > { %1003 = vmatpush.bf16.msra.mxu2 %v1565_v37 }
  0x27   : > { %1437 = vmatmul.msk.f32.gmra.mxu0 %vm425_vm0, %v395_v9 }
  0x28   : > { %1469 = vmatmul.msk.f32.gmra.mxu1 %vm635_vm1, %v361_v10 }
  0x29   : > { %1004 = vmatpush.bf16.msra.mxu2 %v1564_v38 }
  0x2f   : > { %1438 = vmatmul.msk.f32.gmra.mxu0 %vm425_vm0, %v396_v11 }
  0x30   : > { %1470 = vmatmul.msk.f32.gmra.mxu1 %vm635_vm1, %v362_v12  ;;  %v412_v12 = vld [vmem:[%s1672_s21 + $0xa0] sm:$0xff] }
  0x37   : > { %1439 = vmatmul.msk.f32.gmra.mxu0 %vm425_vm0, %v397_v13  ;;  %v378_v13 = vld [vmem:[%s1678_s24 + $0xa0] sm:$0xff] }
  0x38   : > { %1471 = vmatmul.msk.f32.gmra.mxu1 %vm635_vm1, %v363_v14 }
  0x3f   : > { %1440 = vmatmul.msk.f32.gmra.mxu0 %vm425_vm0, %v398_v15 }
  0x40   : > { %1472 = vmatmul.msk.f32.gmra.mxu1 %vm635_vm1, %v364_v16 }
  0x47   : > { %1441 = vmatmul.msk.f32.gmra.mxu0 %vm425_vm0, %v399_v17  ;;  %v413_v17 = vld [vmem:[%s1672_s21 + $0xa8] sm:$0xff] }
  0x48   : > { %1473 = vmatmul.msk.f32.gmra.mxu1 %vm635_vm1, %v365_v18  ;;  %v379_v18 = vld [vmem:[%s1678_s24 + $0xa8] sm:$0xff] }
  0x4f   : > { %1442 = vmatmul.msk.f32.gmra.mxu0 %vm425_vm0, %v400_v19 }
  0x50   : > { %1474 = vmatmul.msk.f32.gmra.mxu1 %vm635_vm1, %v366_v20 }
  0x57   : > { %1443 = vmatmul.msk.f32.gmra.mxu0 %vm425_vm0, %v401_v21 }
  0x58   : > { %1475 = vmatmul.msk.f32.gmra.mxu1 %vm635_vm1, %v367_v22 }
  0x5f   : > { %1444 = vmatmul.msk.f32.gmra.mxu0 %vm425_vm0, %v402_v24 }
  0x60   : > { %1476 = vmatmul.msk.f32.gmra.mxu1 %vm635_vm1, %v368_v25 }
  0x67   : > { %1445 = vmatmul.msk.f32.gmra.mxu0 %vm425_vm0, %v403_v28  ;;  %v380_v28 = vld [vmem:[%s1678_s24 + $0xb0] sm:$0xff] }
  0x68   : > { %1477 = vmatmul.msk.f32.gmra.mxu1 %vm635_vm1, %v369_v29 }
  0x6f   : > { %1446 = vmatmul.msk.f32.gmra.mxu0 %vm425_vm0, %v404_v31 }
  0x70   : > { %1478 = vmatmul.msk.f32.gmra.mxu1 %vm635_vm1, %v370_v32  ;;  %v415_v32 = vld [vmem:[%s1672_s21 + $0xb8] sm:$0xff] }
  0x77   : > { %1447 = vmatmul.msk.f32.gmra.mxu0 %vm425_vm0, %v405_v35 }
  0x78   : > { %1479 = vmatmul.msk.f32.gmra.mxu1 %vm635_vm1, %v371_v36 }
  0x7f   : > { %1448 = vmatmul.msk.f32.gmra.mxu0 %vm425_vm0, %v406_v39 }
  0x80   : > { %1480 = vmatmul.msk.f32.gmra.mxu1 %vm635_vm1, %v372_v40 }
  0x87   : > { %1449 = vmatmul.msk.f32.gmra.mxu0 %vm425_vm0, %v407_v41 }
  0x88   : > { %1481 = vmatmul.msk.f32.gmra.mxu1 %vm635_vm1, %v373_v42  ;;  %v416_v42 = vld [vmem:[%s1672_s21 + $0xc0] sm:$0xff] }
  0x8c   : > { %v539_v43 = vpop.f32.mrf.mxu0 }
  0x8d   : > { %v749_v44 = vpop.f32.mrf.mxu1 }
  0x8e   : > { %v750_v47 = vadd.f32 %v749_v44, %v539_v43  ;;  %v382_v43 = vld [vmem:[%s1678_s24 + $0xc0] sm:$0xff] }
  0x8f   : > { %1450 = vmatmul.msk.f32.gmra.mxu0 %vm425_vm0, %v408_v45 }
  0x90   : > { %1482 = vmatmul.msk.f32.gmra.mxu1 %vm635_vm1, %v374_v46  ;;  %v849_v53 = vadd.f32 %v1775_v48, %v750_v47  ;;  %v417_v47 = vld [vmem:[%s1672_s21 + $0xc8] sm:$0xff] }
  0x92   : > { %v881_v56 = vmax.f32 %v849_v53, 0.0 }
  0x94   : > { %v542_v49 = vpop.f32.mrf.mxu0 }
  0x95   : > { %v752_v50 = vpop.f32.mrf.mxu1 }
  0x96   : > { %v753_v54 = vadd.f32 %v752_v50, %v542_v49  ;;  %v383_v49 = vld [vmem:[%s1678_s24 + $0xc8] sm:$0xff] }
  0x97   : > { %1451 = vmatmul.msk.f32.gmra.mxu0 %vm425_vm0, %v409_v51 }
  0x98   : > { %v850_v55 = vadd.f32 %v1775_v48, %v753_v54  ;;  %1483 = vmatmul.msk.f32.gmra.mxu1 %vm635_vm1, %v375_v52 }
  0x9a   : > { %v882_v57 = vmax.f32 %v850_v55, 0.0 }
  0x9c   : > { %v913_v58 = vpack.c.bf16 %v882_v57, %v881_v56  ;;  %v545_v59 = vpop.f32.mrf.mxu0 }
  0x9d   : > { %v755_v60 = vpop.f32.mrf.mxu1 }
  0x9e   : > { %1005 = vmatmul.bf16.vlgmr.msra.gmra.mxu2 %v913_v58  ;;  %v756_v63 = vadd.f32 %v755_v60, %v545_v59  ;;  %v418_v58 = vld [vmem:[%s1672_s21 + $0xd0] sm:$0xff] }
  0x9f   : > { %1452 = vmatmul.msk.f32.gmra.mxu0 %vm425_vm0, %v410_v61  ;;  %v384_v59 = vld [vmem:[%s1678_s24 + $0xd0] sm:$0xff] }
  0xa0   : > { %1484 = vmatmul.msk.f32.gmra.mxu1 %vm635_vm1, %v376_v62  ;;  %v851_v4 = vadd.f32 %v1775_v48, %v756_v63  ;;  %v419_v63 = vld [vmem:[%s1672_s21 + $0xd8] sm:$0xff] }
  0xa2   : > { %v883_v7 = vmax.f32 %v851_v4, 0.0 }
  0xa4   : > { %v548_v0 = vpop.f32.mrf.mxu0 }
  0xa5   : > { %v758_v1 = vpop.f32.mrf.mxu1 }
  0xa6   : > { %v759_v5 = vadd.f32 %v758_v1, %v548_v0  ;;  %v385_v0 = vld [vmem:[%s1678_s24 + $0xd8] sm:$0xff] }
  0xa7   : > { %1453 = vmatmul.msk.f32.gmra.mxu0 %vm425_vm0, %v411_v2 }
  0xa8   : > { %v852_v6 = vadd.f32 %v1775_v48, %v759_v5  ;;  %1485 = vmatmul.msk.f32.gmra.mxu1 %vm635_vm1, %v377_v3 }
  0xaa   : > { %v884_v8 = vmax.f32 %v852_v6, 0.0 }
  0xac   : > { %v914_v9 = vpack.c.bf16 %v884_v8, %v883_v7  ;;  %v551_v10 = vpop.f32.mrf.mxu0 }
  0xad   : > { %v761_v11 = vpop.f32.mrf.mxu1 }
  0xae   : > { %1010 = vmatmul.bf16.gmra.mxu2 %v914_v9  ;;  %v762_v14 = vadd.f32 %v761_v11, %v551_v10  ;;  %v420_v9 = vld [vmem:[%s1672_s21 + $0xe0] sm:$0xff]  ;;  %v1579_v11 = vld [vmem:[%s2047_s7 + $0x38] sm:$0xff] }
  0xaf   : > { %1454 = vmatmul.msk.f32.gmra.mxu0 %vm425_vm0, %v412_v12  ;;  %v386_v10 = vld [vmem:[%s1678_s24 + $0xe0] sm:$0xff]  ;;  %1202 = vmatpush.bf16.msra.mxu3 %v1579_v11 }
  0xb0   : > { %1486 = vmatmul.msk.f32.gmra.mxu1 %vm635_vm1, %v378_v13  ;;  %v853_v19 = vadd.f32 %v1775_v48, %v762_v14  ;;  %v1578_v13 = vld [vmem:[%s2047_s7 + $0x30] sm:$0xff] }
  0xb2   : > { %v885_v22 = vmax.f32 %v853_v19, 0.0 }
  0xb3   : > { %1203 = vmatpush.bf16.msra.mxu3 %v1578_v13 }
  0xb4   : > { %v554_v15 = vpop.f32.mrf.mxu0 }
  0xb5   : > { %v764_v16 = vpop.f32.mrf.mxu1 }
  0xb6   : > { %v765_v20 = vadd.f32 %v764_v16, %v554_v15  ;;  %v421_v16 = vld [vmem:[%s1672_s21 + $0xe8] sm:$0xff] }
  0xb7   : > { %1455 = vmatmul.msk.f32.gmra.mxu0 %vm425_vm0, %v413_v17  ;;  %v387_v17 = vld [vmem:[%s1678_s24 + $0xe8] sm:$0xff] }
  0xb8   : > { %v854_v21 = vadd.f32 %v1775_v48, %v765_v20  ;;  %1487 = vmatmul.msk.f32.gmra.mxu1 %vm635_vm1, %v379_v18  ;;  %v1577_v20 = vld [vmem:[%s2047_s7 + $0x28] sm:$0xff] }
  0xb9   : > { %1204 = vmatpush.bf16.msra.mxu3 %v1577_v20 }
  0xba   : > { %v886_v23 = vmax.f32 %v854_v21, 0.0 }
  0xbc   : > { %v915_v24 = vpack.c.bf16 %v886_v23, %v885_v22  ;;  %v557_v25 = vpop.f32.mrf.mxu0 }
  0xbd   : > { %v767_v26 = vpop.f32.mrf.mxu1 }
  0xbe   : > { %1015 = vmatmul.bf16.gmra.mxu2 %v915_v24  ;;  %v768_v29 = vadd.f32 %v767_v26, %v557_v25  ;;  %v1576_v24 = vld [vmem:[%s2047_s7 + $0x20] sm:$0xff] }
  0xbf   : > { %1456 = vmatmul.msk.f32.gmra.mxu0 %vm425_vm0, %v414_v27  ;;  %1205 = vmatpush.bf16.msra.mxu3 %v1576_v24 }
  0xc0   : > { %1488 = vmatmul.msk.f32.gmra.mxu1 %vm635_vm1, %v380_v28  ;;  %v855_v34 = vadd.f32 %v1775_v48, %v768_v29  ;;  %v422_v28 = vld [vmem:[%s1672_s21 + $0xf0] sm:$0xff] }
  0xc1   : > { %v388_v29 = vld [vmem:[%s1678_s24 + $0xf0] sm:$0xff] }
  0xc2   : > { %v887_v37 = vmax.f32 %v855_v34, 0.0 }
  0xc4   : > { %v560_v30 = vpop.f32.mrf.mxu0 }
  0xc5   : > { %v770_v31 = vpop.f32.mrf.mxu1 }
  0xc6   : > { %v771_v35 = vadd.f32 %v770_v31, %v560_v30  ;;  %v1575_v30 = vld [vmem:[%s2047_s7 + $0x18] sm:$0xff] }
  0xc7   : > { %1457 = vmatmul.msk.f32.gmra.mxu0 %vm425_vm0, %v415_v32  ;;  %1206 = vmatpush.bf16.msra.mxu3 %v1575_v30  ;;  %v1574_v32 = vld [vmem:[%s2047_s7 + $0x10] sm:$0xff] }
  0xc8   : > { %v856_v36 = vadd.f32 %v1775_v48, %v771_v35  ;;  %1489 = vmatmul.msk.f32.gmra.mxu1 %vm635_vm1, %v381_v33  ;;  %v423_v35 = vld [vmem:[%s1672_s21 + $0xf8] sm:$0xff] }
  0xca   : > { %v888_v38 = vmax.f32 %v856_v36, 0.0  ;;  %v389_v36 = vld [vmem:[%s1678_s24 + $0xf8] sm:$0xff] }
  0xcb   : > { %1207 = vmatpush.bf16.msra.mxu3 %v1574_v32 }
  0xcc   : > { %v916_v39 = vpack.c.bf16 %v888_v38, %v887_v37  ;;  %v563_v40 = vpop.f32.mrf.mxu0 }
  0xcd   : > { %v773_v41 = vpop.f32.mrf.mxu1 }
  0xce   : > { %1020 = vmatmul.bf16.gmra.mxu2 %v916_v39  ;;  %v774_v44 = vadd.f32 %v773_v41, %v563_v40  ;;  %v1573_v39 = vld [vmem:[%s2047_s7 + $0x8] sm:$0xff] }
  0xcf   : > { %1458 = vmatmul.msk.f32.gmra.mxu0 %vm425_vm0, %v416_v42  ;;  %1208 = vmatpush.bf16.msra.mxu3 %v1573_v39 }
  0xd0   : > { %1490 = vmatmul.msk.f32.gmra.mxu1 %vm635_vm1, %v382_v43  ;;  %v857_v50 = vadd.f32 %v1775_v48, %v774_v44  ;;  %v1572_v43 = vld [vmem:[%s2047_s7] sm:$0xff] }
  0xd2   : > { %v889_v53 = vmax.f32 %v857_v50, 0.0 }
  0xd3   : > { %1209 = vmatpush.bf16.msra.mxu3 %v1572_v43 }
  0xd4   : > { %v566_v45 = vpop.f32.mrf.mxu0 }
  0xd5   : > { %v776_v46 = vpop.f32.mrf.mxu1 }
  0xd6   : > { %v777_v51 = vadd.f32 %v776_v46, %v566_v45 }
  0xd7   : > { %1459 = vmatmul.msk.f32.gmra.mxu0 %vm425_vm0, %v417_v47 }
  0xd8   : > { %v858_v52 = vadd.f32 %v1775_v48, %v777_v51  ;;  %1491 = vmatmul.msk.f32.gmra.mxu1 %vm635_vm1, %v383_v49 }
  0xda   : > { %v890_v54 = vmax.f32 %v858_v52, 0.0 }
  0xdc   : > { %v917_v55 = vpack.c.bf16 %v890_v54, %v889_v53  ;;  %v569_v56 = vpop.f32.mrf.mxu0 }
  0xdd   : > { %v779_v57 = vpop.f32.mrf.mxu1 }
  0xde   : > { %1025 = vmatmul.bf16.gmra.mxu2 %v917_v55  ;;  %v780_v60 = vadd.f32 %v779_v57, %v569_v56 }
  0xdf   : > { %1460 = vmatmul.msk.f32.gmra.mxu0 %vm425_vm0, %v418_v58 }
  0xe0   : > { %1492 = vmatmul.msk.f32.gmra.mxu1 %vm635_vm1, %v384_v59  ;;  %v859_v1 = vadd.f32 %v1775_v48, %v780_v60 }
  0xe2   : > { %v891_v4 = vmax.f32 %v859_v1, 0.0 }
  0xe4   : > { %v572_v61 = vpop.f32.mrf.mxu0 }
  0xe5   : > { %v782_v62 = vpop.f32.mrf.mxu1 }
  0xe6   : > { %v783_v2 = vadd.f32 %v782_v62, %v572_v61  ;;  %v1882_v61 = vld [vmem:[%s2046_s6] ss:$0 sm:$0xff] }
  0xe7   : > { %1461 = vmatmul.msk.f32.gmra.mxu0 %vm425_vm0, %v419_v63 }
  0xe8   : > { %v860_v3 = vadd.f32 %v1775_v48, %v783_v2  ;;  %1493 = vmatmul.msk.f32.gmra.mxu1 %vm635_vm1, %v385_v0 }
  0xea   : > { %v892_v5 = vmax.f32 %v860_v3, 0.0 }
  0xec   : > { %v918_v6 = vpack.c.bf16 %v892_v5, %v891_v4  ;;  %v575_v7 = vpop.f32.mrf.mxu0 }
  0xed   : > { %v785_v8 = vpop.f32.mrf.mxu1 }
  0xee   : > { %1030 = vmatmul.bf16.gmra.mxu2 %v918_v6  ;;  %v786_v12 = vadd.f32 %v785_v8, %v575_v7 }
  0xef   : > { %1462 = vmatmul.msk.f32.gmra.mxu0 %vm425_vm0, %v420_v9 }
  0xf0   : > { %1494 = vmatmul.msk.f32.gmra.mxu1 %vm635_vm1, %v386_v10  ;;  %v861_v18 = vadd.f32 %v1775_v48, %v786_v12 }
  0xf2   : > { %v893_v22 = vmax.f32 %v861_v18, 0.0 }
  0xf4   : > { %v578_v14 = vpop.f32.mrf.mxu0 }
  0xf5   : > { %v788_v15 = vpop.f32.mrf.mxu1 }
  0xf6   : > { %v789_v19 = vadd.f32 %v788_v15, %v578_v14 }
  0xf7   : > { %1463 = vmatmul.msk.f32.gmra.mxu0 %vm425_vm0, %v421_v16 }
  0xf8   : > { %v862_v21 = vadd.f32 %v1775_v48, %v789_v19  ;;  %1495 = vmatmul.msk.f32.gmra.mxu1 %vm635_vm1, %v387_v17 }
  0xfa   : > { %v894_v23 = vmax.f32 %v862_v21, 0.0 }
  0xfc   : > { %v919_v25 = vpack.c.bf16 %v894_v23, %v893_v22  ;;  %v581_v26 = vpop.f32.mrf.mxu0 }
  0xfd   : > { %v791_v27 = vpop.f32.mrf.mxu1 }
  0xfe   : > { %1035 = vmatmul.bf16.gmra.mxu2 %v919_v25  ;;  %v792_v31 = vadd.f32 %v791_v27, %v581_v26 }
  0xff   : > { %1464 = vmatmul.msk.f32.gmra.mxu0 %vm425_vm0, %v422_v28 }
 0x100   : > { %1496 = vmatmul.msk.f32.gmra.mxu1 %vm635_vm1, %v388_v29  ;;  %v863_v37 = vadd.f32 %v1775_v48, %v792_v31 }
 0x102   : > { %v895_v41 = vmax.f32 %v863_v37, 0.0 }
 0x104   : > { %v584_v33 = vpop.f32.mrf.mxu0 }
 0x105   : > { %v794_v34 = vpop.f32.mrf.mxu1 }
 0x106   : > { %v795_v38 = vadd.f32 %v794_v34, %v584_v33 }
 0x107   : > { %1465 = vmatmul.msk.f32.gmra.mxu0 %vm425_vm0, %v423_v35 }
 0x108   : > { %v864_v40 = vadd.f32 %v1775_v48, %v795_v38  ;;  %1497 = vmatmul.msk.f32.gmra.mxu1 %vm635_vm1, %v389_v36 }
 0x10a   : > { %v896_v42 = vmax.f32 %v864_v40, 0.0 }
 0x10c   : > { %v920_v44 = vpack.c.bf16 %v896_v42, %v895_v41  ;;  %v587_v45 = vpop.f32.mrf.mxu0 }
 0x10d   : > { %v797_v46 = vpop.f32.mrf.mxu1 }
 0x10e   : > { %1040 = vmatmul.bf16.gmra.mxu2 %v920_v44  ;;  %v798_v47 = vadd.f32 %v797_v46, %v587_v45 }
 0x110   : > { %v865_v51 = vadd.f32 %v1775_v48, %v798_v47 }
 0x112   : > { %v897_v54 = vmax.f32 %v865_v51, 0.0 }
 0x114   : > { %v590_v49 = vpop.f32.mrf.mxu0 }
 0x115   : > { %v800_v50 = vpop.f32.mrf.mxu1 }
 0x116   : > { %v801_v52 = vadd.f32 %v800_v50, %v590_v49 }
 0x118   : > { %v866_v53 = vadd.f32 %v1775_v48, %v801_v52 }
 0x11a   : > { %v898_v55 = vmax.f32 %v866_v53, 0.0 }
 0x11c   : > { %v921_v56 = vpack.c.bf16 %v898_v55, %v897_v54  ;;  %v593_v57 = vpop.f32.mrf.mxu0 }
 0x11d   : > { %v803_v58 = vpop.f32.mrf.mxu1 }
 0x11e   : > { %1045 = vmatmul.bf16.gmra.mxu2 %v921_v56  ;;  %v804_v60 = vadd.f32 %v803_v58, %v593_v57 }
 0x120   : > { %v867_v0 = vadd.f32 %v1775_v48, %v804_v60 }
 0x121   : > { %v1006_v59 = vpop.f32.mrf.mxu2 }
 0x122   : > { %v1007_v2 = vadd.f32 %v1882_v61, %v1006_v59  ;;  %v899_v5 = vmax.f32 %v867_v0, 0.0 }
 0x124   : > { %v596_v62 = vpop.f32.mrf.mxu0  ;;  %v1086_v8 = vmax.f32 %v1007_v2, 0.0 }
 0x125   : > { %v806_v63 = vpop.f32.mrf.mxu1 }
 0x126   : > { %v807_v1 = vadd.f32 %v806_v63, %v596_v62 }
 0x128   : > { %v868_v3 = vadd.f32 %v1775_v48, %v807_v1 }
 0x129   : > { %v1008_v4 = vpop.f32.mrf.mxu2 }
 0x12a   : > { %v900_v6 = vmax.f32 %v868_v3, 0.0  ;;  %v1009_v7 = vadd.f32 %v1882_v61, %v1008_v4 }
 0x12c   : > { %v1087_v9 = vmax.f32 %v1009_v7, 0.0  ;;  %v922_v10 = vpack.c.bf16 %v900_v6, %v899_v5  ;;  %v599_v11 = vpop.f32.mrf.mxu0 }
 0x12d   : > { %v809_v12 = vpop.f32.mrf.mxu1 }
 0x12e   : > { %1050 = vmatmul.bf16.gmra.mxu2 %v922_v10  ;;  %v1118_v13 = vpack.c.bf16 %v1087_v9, %v1086_v8  ;;  %v810_v15 = vadd.f32 %v809_v12, %v599_v11 }
 0x130   : > { %1210 = vmatmul.bf16.vlgmr.msra.gmra.mxu3 %v1118_v13  ;;  %v869_v18 = vadd.f32 %v1775_v48, %v810_v15 }
 0x131   : > { %v1011_v14 = vpop.f32.mrf.mxu2 }
 0x132   : > { %v1012_v20 = vadd.f32 %v1882_v61, %v1011_v14  ;;  %v901_v23 = vmax.f32 %v869_v18, 0.0 }
 0x134   : > { %v602_v16 = vpop.f32.mrf.mxu0  ;;  %v1088_v26 = vmax.f32 %v1012_v20, 0.0 }
 0x135   : > { %v812_v17 = vpop.f32.mrf.mxu1 }
 0x136   : > { %v813_v19 = vadd.f32 %v812_v17, %v602_v16 }
 0x138   : > { %v870_v21 = vadd.f32 %v1775_v48, %v813_v19 }
 0x139   : > { %v1013_v22 = vpop.f32.mrf.mxu2 }
 0x13a   : > { %v902_v24 = vmax.f32 %v870_v21, 0.0  ;;  %v1014_v25 = vadd.f32 %v1882_v61, %v1013_v22 }
 0x13c   : > { %v1089_v27 = vmax.f32 %v1014_v25, 0.0  ;;  %v923_v28 = vpack.c.bf16 %v902_v24, %v901_v23  ;;  %v605_v29 = vpop.f32.mrf.mxu0 }
 0x13d   : > { %v815_v30 = vpop.f32.mrf.mxu1 }
 0x13e   : > { %1055 = vmatmul.bf16.gmra.mxu2 %v923_v28  ;;  %v1119_v31 = vpack.c.bf16 %v1089_v27, %v1088_v26  ;;  %v816_v33 = vadd.f32 %v815_v30, %v605_v29 }
 0x140   : > { %1215 = vmatmul.bf16.gmra.mxu3 %v1119_v31  ;;  %v871_v36 = vadd.f32 %v1775_v48, %v816_v33 }
 0x141   : > { %v1016_v32 = vpop.f32.mrf.mxu2 }
 0x142   : > { %v1017_v38 = vadd.f32 %v1882_v61, %v1016_v32  ;;  %v903_v41 = vmax.f32 %v871_v36, 0.0 }
 0x144   : > { %v608_v34 = vpop.f32.mrf.mxu0  ;;  %v1090_v44 = vmax.f32 %v1017_v38, 0.0 }
 0x145   : > { %v818_v35 = vpop.f32.mrf.mxu1 }
 0x146   : > { %v819_v37 = vadd.f32 %v818_v35, %v608_v34 }
 0x148   : > { %v872_v39 = vadd.f32 %v1775_v48, %v819_v37 }
 0x149   : > { %v1018_v40 = vpop.f32.mrf.mxu2 }
 0x14a   : > { %v904_v42 = vmax.f32 %v872_v39, 0.0  ;;  %v1019_v43 = vadd.f32 %v1882_v61, %v1018_v40 }
 0x14c   : > { %v1091_v45 = vmax.f32 %v1019_v43, 0.0  ;;  %v924_v46 = vpack.c.bf16 %v904_v42, %v903_v41  ;;  %v611_v47 = vpop.f32.mrf.mxu0 }
 0x14d   : > { %v821_v49 = vpop.f32.mrf.mxu1 }
 0x14e   : > { %1060 = vmatmul.bf16.gmra.mxu2 %v924_v46  ;;  %v1120_v50 = vpack.c.bf16 %v1091_v45, %v1090_v44  ;;  %v822_v52 = vadd.f32 %v821_v49, %v611_v47 }
 0x150   : > { %1220 = vmatmul.bf16.gmra.mxu3 %v1120_v50  ;;  %v873_v55 = vadd.f32 %v1775_v48, %v822_v52 }
 0x151   : > { %v1021_v51 = vpop.f32.mrf.mxu2 }
 0x152   : > { %v1022_v57 = vadd.f32 %v1882_v61, %v1021_v51  ;;  %v905_v60 = vmax.f32 %v873_v55, 0.0 }
 0x154   : > { %v614_v53 = vpop.f32.mrf.mxu0  ;;  %v1092_v0 = vmax.f32 %v1022_v57, 0.0 }
 0x155   : > { %v824_v54 = vpop.f32.mrf.mxu1 }
 0x156   : > { %v825_v56 = vadd.f32 %v824_v54, %v614_v53 }
 0x158   : > { %v874_v58 = vadd.f32 %v1775_v48, %v825_v56 }
 0x159   : > { %v1023_v59 = vpop.f32.mrf.mxu2 }
 0x15a   : > { %v906_v62 = vmax.f32 %v874_v58, 0.0  ;;  %v1024_v63 = vadd.f32 %v1882_v61, %v1023_v59 }
 0x15c   : > { %v1093_v1 = vmax.f32 %v1024_v63, 0.0  ;;  %v925_v2 = vpack.c.bf16 %v906_v62, %v905_v60  ;;  %v617_v3 = vpop.f32.mrf.mxu0 }
 0x15d   : > { %v827_v4 = vpop.f32.mrf.mxu1 }
 0x15e   : > { %1065 = vmatmul.bf16.gmra.mxu2 %v925_v2  ;;  %v1121_v5 = vpack.c.bf16 %v1093_v1, %v1092_v0  ;;  %v828_v7 = vadd.f32 %v827_v4, %v617_v3 }
 0x160   : > { %1225 = vmatmul.bf16.gmra.mxu3 %v1121_v5  ;;  %v875_v10 = vadd.f32 %v1775_v48, %v828_v7 }
 0x161   : > { %v1026_v6 = vpop.f32.mrf.mxu2 }
 0x162   : > { %v1027_v12 = vadd.f32 %v1882_v61, %v1026_v6  ;;  %v907_v15 = vmax.f32 %v875_v10, 0.0 }
 0x164   : > { %v620_v8 = vpop.f32.mrf.mxu0  ;;  %v1094_v18 = vmax.f32 %v1027_v12, 0.0 }
 0x165   : > { %v830_v9 = vpop.f32.mrf.mxu1 }
 0x166   : > { %v831_v11 = vadd.f32 %v830_v9, %v620_v8  ;;  %v1919_v9 = vld [vmem:[%s2048_s8] ss:$0 sm:$0xff] }
 0x168   : > { %v876_v13 = vadd.f32 %v1775_v48, %v831_v11 }
 0x169   : > { %v1028_v14 = vpop.f32.mrf.mxu2 }
 0x16a   : > { %v908_v16 = vmax.f32 %v876_v13, 0.0  ;;  %v1029_v17 = vadd.f32 %v1882_v61, %v1028_v14 }
 0x16c   : > { %v1095_v19 = vmax.f32 %v1029_v17, 0.0  ;;  %v926_v20 = vpack.c.bf16 %v908_v16, %v907_v15  ;;  %v623_v21 = vpop.f32.mrf.mxu0 }
 0x16d   : > { %v833_v22 = vpop.f32.mrf.mxu1 }
 0x16e   : > { %1070 = vmatmul.bf16.gmra.mxu2 %v926_v20  ;;  %v1122_v23 = vpack.c.bf16 %v1095_v19, %v1094_v18  ;;  %v834_v25 = vadd.f32 %v833_v22, %v623_v21 }
 0x170   : > { %1230 = vmatmul.bf16.gmra.mxu3 %v1122_v23  ;;  %v877_v28 = vadd.f32 %v1775_v48, %v834_v25 }
 0x171   : > { %v1031_v24 = vpop.f32.mrf.mxu2 }
 0x172   : > { %v1032_v30 = vadd.f32 %v1882_v61, %v1031_v24  ;;  %v909_v33 = vmax.f32 %v877_v28, 0.0 }
 0x174   : > { %v626_v26 = vpop.f32.mrf.mxu0  ;;  %v1096_v36 = vmax.f32 %v1032_v30, 0.0 }
 0x175   : > { %v836_v27 = vpop.f32.mrf.mxu1 }
 0x176   : > { %v837_v29 = vadd.f32 %v836_v27, %v626_v26 }
 0x178   : > { %v878_v31 = vadd.f32 %v1775_v48, %v837_v29 }
 0x179   : > { %v1033_v32 = vpop.f32.mrf.mxu2 }
 0x17a   : > { %v910_v34 = vmax.f32 %v878_v31, 0.0  ;;  %v1034_v35 = vadd.f32 %v1882_v61, %v1033_v32 }
 0x17c   : > { %v1097_v37 = vmax.f32 %v1034_v35, 0.0  ;;  %v927_v38 = vpack.c.bf16 %v910_v34, %v909_v33  ;;  %v629_v39 = vpop.f32.mrf.mxu0 }
 0x17d   : > { %v839_v40 = vpop.f32.mrf.mxu1 }
 0x17e   : > { %1075 = vmatmul.bf16.gmra.mxu2 %v927_v38  ;;  %v1123_v41 = vpack.c.bf16 %v1097_v37, %v1096_v36  ;;  %v840_v43 = vadd.f32 %v839_v40, %v629_v39 }
 0x180   : > { %1235 = vmatmul.bf16.gmra.mxu3 %v1123_v41  ;;  %v879_v46 = vadd.f32 %v1775_v48, %v840_v43 }
 0x181   : > { %v1036_v42 = vpop.f32.mrf.mxu2 }
 0x182   : > { %v1037_v49 = vadd.f32 %v1882_v61, %v1036_v42  ;;  %v911_v52 = vmax.f32 %v879_v46, 0.0 }
 0x184   : > { %v632_v44 = vpop.f32.mrf.mxu0  ;;  %v1098_v55 = vmax.f32 %v1037_v49, 0.0 }
 0x185   : > { %v842_v45 = vpop.f32.mrf.mxu1 }
 0x186   : > { %v843_v47 = vadd.f32 %v842_v45, %v632_v44 }
 0x188   : > { %v880_v50 = vadd.f32 %v1775_v48, %v843_v47 }
 0x189   : > { %v1038_v51 = vpop.f32.mrf.mxu2 }
 0x18a   : > { %v912_v53 = vmax.f32 %v880_v50, 0.0  ;;  %v1039_v54 = vadd.f32 %v1882_v61, %v1038_v51 }
 0x18c   : > { %v1099_v56 = vmax.f32 %v1039_v54, 0.0  ;;  %v928_v57 = vpack.c.bf16 %v912_v53, %v911_v52 }
 0x18e   : > { %1080 = vmatmul.bf16.gmra.mxu2 %v928_v57  ;;  %v1124_v58 = vpack.c.bf16 %v1099_v56, %v1098_v55 }
 0x190   : > { %1240 = vmatmul.bf16.gmra.mxu3 %v1124_v58 }
 0x191   : > { %v1041_v59 = vpop.f32.mrf.mxu2 }
 0x192   : > { %v1042_v60 = vadd.f32 %v1882_v61, %v1041_v59 }
 0x194   : > { %v1100_v0 = vmax.f32 %v1042_v60, 0.0 }
 0x199   : > { %v1043_v62 = vpop.f32.mrf.mxu2 }
 0x19a   : > { %v1044_v63 = vadd.f32 %v1882_v61, %v1043_v62 }
 0x19c   : > { %v1101_v48 = vmax.f32 %v1044_v63, 0.0 }
 0x19e   : > { %v1125_v1 = vpack.c.bf16 %v1101_v48, %v1100_v0 }
 0x1a0   : > { %1245 = vmatmul.bf16.gmra.mxu3 %v1125_v1 }
 0x1a1   : > { %v1046_v2 = vpop.f32.mrf.mxu2 }
 0x1a2   : > { %v1047_v3 = vadd.f32 %v1882_v61, %v1046_v2 }
 0x1a4   : > { %v1102_v6 = vmax.f32 %v1047_v3, 0.0 }
 0x1a9   : > { %v1048_v4 = vpop.f32.mrf.mxu2 }
 0x1aa   : > { %v1049_v5 = vadd.f32 %v1882_v61, %v1048_v4 }
 0x1ac   : > { %v1103_v7 = vmax.f32 %v1049_v5, 0.0 }
 0x1ae   : > { %v1126_v8 = vpack.c.bf16 %v1103_v7, %v1102_v6 }
 0x1b0   : > { %1250 = vmatmul.bf16.gmra.mxu3 %v1126_v8 }
 0x1b1   : > { %v1051_v10 = vpop.f32.mrf.mxu2 }
 0x1b2   : > { %v1052_v14 = vadd.f32 %v1882_v61, %v1051_v10 }
 0x1b3   : > { %v1211_v11 = vpop.f32.mrf.mxu3 }
 0x1b4   : > { %v1212_v12 = vadd.f32 %v1919_v9, %v1211_v11  ;;  %v1104_v18 = vmax.f32 %v1052_v14, 0.0 }
 0x1b6   : > { %v1291_v13 = vmax.f32 %v1212_v12, 0.0 }
 0x1b8   : > { %1323 = vst.msk [vmem:[%s1926_s29] sm:$0xff] %vm635_vm1, %v1291_v13 }
 0x1b9   : > { %v1053_v15 = vpop.f32.mrf.mxu2 }
 0x1ba   : > { %v1054_v16 = vadd.f32 %v1882_v61, %v1053_v15 }
 0x1bb   : > { %v1213_v17 = vpop.f32.mrf.mxu3 }
 0x1bc   : > { %v1105_v19 = vmax.f32 %v1054_v16, 0.0  ;;  %v1214_v20 = vadd.f32 %v1919_v9, %v1213_v17 }
 0x1be   : > { %v1292_v21 = vmax.f32 %v1214_v20, 0.0  ;;  %v1127_v22 = vpack.c.bf16 %v1105_v19, %v1104_v18 }
 0x1c0   : > { %1324 = vst.msk [vmem:[%s1926_s29 + $0x8] sm:$0xff] %vm635_vm1, %v1292_v21  ;;  %1255 = vmatmul.bf16.gmra.mxu3 %v1127_v22 }
 0x1c1   : > { %v1056_v23 = vpop.f32.mrf.mxu2 }
 0x1c2   : > { %v1057_v27 = vadd.f32 %v1882_v61, %v1056_v23 }
 0x1c3   : > { %v1216_v24 = vpop.f32.mrf.mxu3 }
 0x1c4   : > { %v1217_v25 = vadd.f32 %v1919_v9, %v1216_v24  ;;  %v1106_v31 = vmax.f32 %v1057_v27, 0.0 }
 0x1c6   : > { %v1293_v26 = vmax.f32 %v1217_v25, 0.0 }
 0x1c8   : > { %1325 = vst.msk [vmem:[%s1926_s29 + $0x10] sm:$0xff] %vm635_vm1, %v1293_v26 }
 0x1c9   : > { %v1058_v28 = vpop.f32.mrf.mxu2 }
 0x1ca   : > { %v1059_v29 = vadd.f32 %v1882_v61, %v1058_v28 }
 0x1cb   : > { %v1218_v30 = vpop.f32.mrf.mxu3 }
 0x1cc   : > { %v1107_v32 = vmax.f32 %v1059_v29, 0.0  ;;  %v1219_v33 = vadd.f32 %v1919_v9, %v1218_v30 }
 0x1ce   : > { %v1294_v34 = vmax.f32 %v1219_v33, 0.0  ;;  %v1128_v35 = vpack.c.bf16 %v1107_v32, %v1106_v31 }
 0x1d0   : > { %1326 = vst.msk [vmem:[%s1926_s29 + $0x18] sm:$0xff] %vm635_vm1, %v1294_v34  ;;  %1260 = vmatmul.bf16.gmra.mxu3 %v1128_v35 }
 0x1d1   : > { %v1061_v36 = vpop.f32.mrf.mxu2 }
 0x1d2   : > { %v1062_v40 = vadd.f32 %v1882_v61, %v1061_v36 }
 0x1d3   : > { %v1221_v37 = vpop.f32.mrf.mxu3 }
 0x1d4   : > { %v1222_v38 = vadd.f32 %v1919_v9, %v1221_v37  ;;  %v1108_v44 = vmax.f32 %v1062_v40, 0.0 }
 0x1d6   : > { %v1295_v39 = vmax.f32 %v1222_v38, 0.0 }
 0x1d8   : > { %1327 = vst.msk [vmem:[%s1926_s29 + $0x20] sm:$0xff] %vm635_vm1, %v1295_v39 }
 0x1d9   : > { %v1063_v41 = vpop.f32.mrf.mxu2 }
 0x1da   : > { %v1064_v42 = vadd.f32 %v1882_v61, %v1063_v41 }
 0x1db   : > { %v1223_v43 = vpop.f32.mrf.mxu3 }
 0x1dc   : > { %v1109_v45 = vmax.f32 %v1064_v42, 0.0  ;;  %v1224_v46 = vadd.f32 %v1919_v9, %v1223_v43 }
 0x1de   : > { %v1296_v47 = vmax.f32 %v1224_v46, 0.0  ;;  %v1129_v49 = vpack.c.bf16 %v1109_v45, %v1108_v44 }
 0x1e0   : > { %1328 = vst.msk [vmem:[%s1926_s29 + $0x28] sm:$0xff] %vm635_vm1, %v1296_v47  ;;  %1265 = vmatmul.bf16.gmra.mxu3 %v1129_v49 }
 0x1e1   : > { %v1066_v50 = vpop.f32.mrf.mxu2 }
 0x1e2   : > { %v1067_v54 = vadd.f32 %v1882_v61, %v1066_v50 }
 0x1e3   : > { %v1226_v51 = vpop.f32.mrf.mxu3 }
 0x1e4   : > { %v1227_v52 = vadd.f32 %v1919_v9, %v1226_v51  ;;  %v1110_v58 = vmax.f32 %v1067_v54, 0.0 }
 0x1e6   : > { %v1297_v53 = vmax.f32 %v1227_v52, 0.0 }
 0x1e8   : > { %1329 = vst.msk [vmem:[%s1926_s29 + $0x30] sm:$0xff] %vm635_vm1, %v1297_v53 }
 0x1e9   : > { %v1068_v55 = vpop.f32.mrf.mxu2 }
 0x1ea   : > { %v1069_v56 = vadd.f32 %v1882_v61, %v1068_v55 }
 0x1eb   : > { %v1228_v57 = vpop.f32.mrf.mxu3 }
 0x1ec   : > { %v1111_v59 = vmax.f32 %v1069_v56, 0.0  ;;  %v1229_v60 = vadd.f32 %v1919_v9, %v1228_v57 }
 0x1ee   : > { %v1130_v62 = vpack.c.bf16 %v1111_v59, %v1110_v58  ;;  %v1298_v63 = vmax.f32 %v1229_v60, 0.0 }
 0x1f0   : > { %1330 = vst.msk [vmem:[%s1926_s29 + $0x38] sm:$0xff] %vm635_vm1, %v1298_v63  ;;  %1270 = vmatmul.bf16.gmra.mxu3 %v1130_v62 }
 0x1f1   : > { %v1071_v0 = vpop.f32.mrf.mxu2 }
 0x1f2   : > { %v1072_v3 = vadd.f32 %v1882_v61, %v1071_v0 }
 0x1f3   : > { %v1231_v48 = vpop.f32.mrf.mxu3 }
 0x1f4   : > { %v1232_v1 = vadd.f32 %v1919_v9, %v1231_v48  ;;  %v1112_v7 = vmax.f32 %v1072_v3, 0.0 }
 0x1f6   : > { %v1299_v2 = vmax.f32 %v1232_v1, 0.0 }
 0x1f8   : > { %1331 = vst.msk [vmem:[%s1926_s29 + $0x40] sm:$0xff] %vm635_vm1, %v1299_v2 }
 0x1f9   : > { %v1073_v4 = vpop.f32.mrf.mxu2 }
 0x1fa   : > { %v1074_v5 = vadd.f32 %v1882_v61, %v1073_v4 }
 0x1fb   : > { %v1233_v6 = vpop.f32.mrf.mxu3 }
 0x1fc   : > { %v1113_v8 = vmax.f32 %v1074_v5, 0.0  ;;  %v1234_v10 = vadd.f32 %v1919_v9, %v1233_v6 }
 0x1fe   : > { %v1131_v11 = vpack.c.bf16 %v1113_v8, %v1112_v7  ;;  %v1300_v12 = vmax.f32 %v1234_v10, 0.0 }
 0x200   : > { %1332 = vst.msk [vmem:[%s1926_s29 + $0x48] sm:$0xff] %vm635_vm1, %v1300_v12  ;;  %1275 = vmatmul.bf16.gmra.mxu3 %v1131_v11 }
 0x201   : > { %v1076_v13 = vpop.f32.mrf.mxu2 }
 0x202   : > { %v1077_v17 = vadd.f32 %v1882_v61, %v1076_v13 }
 0x203   : > { %v1236_v14 = vpop.f32.mrf.mxu3 }
 0x204   : > { %v1237_v15 = vadd.f32 %v1919_v9, %v1236_v14  ;;  %v1114_v21 = vmax.f32 %v1077_v17, 0.0 }
 0x206   : > { %v1301_v16 = vmax.f32 %v1237_v15, 0.0 }
 0x208   : > { %1333 = vst.msk [vmem:[%s1926_s29 + $0x50] sm:$0xff] %vm635_vm1, %v1301_v16 }
 0x209   : > { %v1078_v18 = vpop.f32.mrf.mxu2 }
 0x20a   : > { %v1079_v19 = vadd.f32 %v1882_v61, %v1078_v18 }
 0x20b   : > { %v1238_v20 = vpop.f32.mrf.mxu3 }
 0x20c   : > { %v1115_v22 = vmax.f32 %v1079_v19, 0.0  ;;  %v1239_v23 = vadd.f32 %v1919_v9, %v1238_v20 }
 0x20e   : > { %v1132_v24 = vpack.c.bf16 %v1115_v22, %v1114_v21  ;;  %v1302_v25 = vmax.f32 %v1239_v23, 0.0 }
 0x210   : > { %1334 = vst.msk [vmem:[%s1926_s29 + $0x58] sm:$0xff] %vm635_vm1, %v1302_v25  ;;  %1280 = vmatmul.bf16.gmra.mxu3 %v1132_v24 }
 0x211   : > { %v1081_v26 = vpop.f32.mrf.mxu2 }
 0x212   : > { %v1082_v30 = vadd.f32 %v1882_v61, %v1081_v26 }
 0x213   : > { %v1241_v27 = vpop.f32.mrf.mxu3 }
 0x214   : > { %v1242_v28 = vadd.f32 %v1919_v9, %v1241_v27  ;;  %v1116_v34 = vmax.f32 %v1082_v30, 0.0 }
 0x216   : > { %v1303_v29 = vmax.f32 %v1242_v28, 0.0 }
 0x218   : > { %1335 = vst.msk [vmem:[%s1926_s29 + $0x60] sm:$0xff] %vm635_vm1, %v1303_v29 }
 0x219   : > { %v1083_v31 = vpop.f32.mrf.mxu2 }
 0x21a   : > { %v1084_v32 = vadd.f32 %v1882_v61, %v1083_v31 }
 0x21b   : > { %v1243_v33 = vpop.f32.mrf.mxu3 }
 0x21c   : > { %v1117_v35 = vmax.f32 %v1084_v32, 0.0  ;;  %v1244_v36 = vadd.f32 %v1919_v9, %v1243_v33 }
 0x21e   : > { %v1133_v37 = vpack.c.bf16 %v1117_v35, %v1116_v34  ;;  %v1304_v38 = vmax.f32 %v1244_v36, 0.0 }
 0x220   : > { %1336 = vst.msk [vmem:[%s1926_s29 + $0x68] sm:$0xff] %vm635_vm1, %v1304_v38  ;;  %1285 = vmatmul.bf16.gmra.mxu3 %v1133_v37 }
 0x223   : > { %v1246_v39 = vpop.f32.mrf.mxu3 }
 0x224   : > { %v1247_v40 = vadd.f32 %v1919_v9, %v1246_v39 }
 0x226   : > { %v1305_v41 = vmax.f32 %v1247_v40, 0.0 }
 0x228   : > { %1337 = vst.msk [vmem:[%s1926_s29 + $0x70] sm:$0xff] %vm635_vm1, %v1305_v41 }
 0x22b   : > { %v1248_v61 = vpop.f32.mrf.mxu3 }
 0x22c   : > { %v1249_v42 = vadd.f32 %v1919_v9, %v1248_v61 }
 0x22e   : > { %v1306_v43 = vmax.f32 %v1249_v42, 0.0 }
 0x230   : > { %1338 = vst.msk [vmem:[%s1926_s29 + $0x78] sm:$0xff] %vm635_vm1, %v1306_v43 }
 0x233   : > { %v1251_v44 = vpop.f32.mrf.mxu3 }
 0x234   : > { %v1252_v45 = vadd.f32 %v1919_v9, %v1251_v44 }
 0x236   : > { %v1307_v46 = vmax.f32 %v1252_v45, 0.0 }
 0x238   : > { %1339 = vst.msk [vmem:[%s1926_s29 + $0x80] sm:$0xff] %vm635_vm1, %v1307_v46 }
 0x23b   : > { %v1253_v47 = vpop.f32.mrf.mxu3 }
 0x23c   : > { %v1254_v49 = vadd.f32 %v1919_v9, %v1253_v47 }
 0x23e   : > { %v1308_v50 = vmax.f32 %v1254_v49, 0.0 }
 0x240   : > { %1340 = vst.msk [vmem:[%s1926_s29 + $0x88] sm:$0xff] %vm635_vm1, %v1308_v50 }
 0x243   : > { %v1256_v51 = vpop.f32.mrf.mxu3 }
 0x244   : > { %v1257_v52 = vadd.f32 %v1919_v9, %v1256_v51 }
 0x246   : > { %v1309_v53 = vmax.f32 %v1257_v52, 0.0 }
 0x248   : > { %1341 = vst.msk [vmem:[%s1926_s29 + $0x90] sm:$0xff] %vm635_vm1, %v1309_v53 }
 0x24b   : > { %v1258_v54 = vpop.f32.mrf.mxu3 }
 0x24c   : > { %v1259_v55 = vadd.f32 %v1919_v9, %v1258_v54 }
 0x24e   : > { %v1310_v56 = vmax.f32 %v1259_v55, 0.0 }
 0x250   : > { %1342 = vst.msk [vmem:[%s1926_s29 + $0x98] sm:$0xff] %vm635_vm1, %v1310_v56 }
 0x253   : > { %v1261_v57 = vpop.f32.mrf.mxu3 }
 0x254   : > { %v1262_v58 = vadd.f32 %v1919_v9, %v1261_v57 }
 0x256   : > { %v1311_v59 = vmax.f32 %v1262_v58, 0.0 }
 0x258   : > { %1343 = vst.msk [vmem:[%s1926_s29 + $0xa0] sm:$0xff] %vm635_vm1, %v1311_v59 }
 0x25b   : > { %v1263_v60 = vpop.f32.mrf.mxu3 }
 0x25c   : > { %v1264_v62 = vadd.f32 %v1919_v9, %v1263_v60 }
 0x25e   : > { %v1312_v63 = vmax.f32 %v1264_v62, 0.0 }
 0x260   : > { %1344 = vst.msk [vmem:[%s1926_s29 + $0xa8] sm:$0xff] %vm635_vm1, %v1312_v63 }
 0x263   : > { %v1266_v0 = vpop.f32.mrf.mxu3 }
 0x264   : > { %v1267_v48 = vadd.f32 %v1919_v9, %v1266_v0 }
 0x266   : > { %v1313_v1 = vmax.f32 %v1267_v48, 0.0 }
 0x268   : > { %1345 = vst.msk [vmem:[%s1926_s29 + $0xb0] sm:$0xff] %vm635_vm1, %v1313_v1 }
 0x26b   : > { %v1268_v2 = vpop.f32.mrf.mxu3 }
 0x26c   : > { %v1269_v3 = vadd.f32 %v1919_v9, %v1268_v2 }
 0x26e   : > { %v1314_v4 = vmax.f32 %v1269_v3, 0.0 }
 0x270   : > { %1346 = vst.msk [vmem:[%s1926_s29 + $0xb8] sm:$0xff] %vm635_vm1, %v1314_v4 }
 0x273   : > { %v1271_v5 = vpop.f32.mrf.mxu3 }
 0x274   : > { %v1272_v6 = vadd.f32 %v1919_v9, %v1271_v5 }
 0x276   : > { %v1315_v7 = vmax.f32 %v1272_v6, 0.0 }
 0x278   : > { %1347 = vst.msk [vmem:[%s1926_s29 + $0xc0] sm:$0xff] %vm635_vm1, %v1315_v7 }
 0x27b   : > { %v1273_v8 = vpop.f32.mrf.mxu3 }
 0x27c   : > { %v1274_v10 = vadd.f32 %v1919_v9, %v1273_v8 }
 0x27e   : > { %v1316_v11 = vmax.f32 %v1274_v10, 0.0 }
 0x280   : > { %1348 = vst.msk [vmem:[%s1926_s29 + $0xc8] sm:$0xff] %vm635_vm1, %v1316_v11 }
 0x283   : > { %v1276_v12 = vpop.f32.mrf.mxu3 }
 0x284   : > { %v1277_v13 = vadd.f32 %v1919_v9, %v1276_v12 }
 0x286   : > { %v1317_v14 = vmax.f32 %v1277_v13, 0.0 }
 0x288   : > { %1349 = vst.msk [vmem:[%s1926_s29 + $0xd0] sm:$0xff] %vm635_vm1, %v1317_v14 }
 0x28b   : > { %v1278_v15 = vpop.f32.mrf.mxu3 }
 0x28c   : > { %v1279_v16 = vadd.f32 %v1919_v9, %v1278_v15 }
 0x28e   : > { %v1318_v17 = vmax.f32 %v1279_v16, 0.0 }
 0x290   : > { %1350 = vst.msk [vmem:[%s1926_s29 + $0xd8] sm:$0xff] %vm635_vm1, %v1318_v17 }
 0x293   : > { %v1281_v18 = vpop.f32.mrf.mxu3 }
 0x294   : > { %v1282_v19 = vadd.f32 %v1919_v9, %v1281_v18 }
 0x296   : > { %v1319_v20 = vmax.f32 %v1282_v19, 0.0 }
 0x298   : > { %1351 = vst.msk [vmem:[%s1926_s29 + $0xe0] sm:$0xff] %vm635_vm1, %v1319_v20 }
 0x29b   : > { %v1283_v21 = vpop.f32.mrf.mxu3 }
 0x29c   : > { %v1284_v22 = vadd.f32 %v1919_v9, %v1283_v21 }
 0x29e   : > { %v1320_v23 = vmax.f32 %v1284_v22, 0.0 }
 0x2a0   : > { %1352 = vst.msk [vmem:[%s1926_s29 + $0xe8] sm:$0xff] %vm635_vm1, %v1320_v23 }
 0x2a3   : > { %v1286_v24 = vpop.f32.mrf.mxu3 }
 0x2a4   : > { %v1287_v25 = vadd.f32 %v1919_v9, %v1286_v24 }
 0x2a6   : > { %v1321_v26 = vmax.f32 %v1287_v25, 0.0 }
 0x2a8   : > { %1353 = vst.msk [vmem:[%s1926_s29 + $0xf0] sm:$0xff] %vm635_vm1, %v1321_v26 }
 0x2ab   : > { %v1288_v27 = vpop.f32.mrf.mxu3 }
 0x2ac   : > { %v1289_v28 = vadd.f32 %v1919_v9, %v1288_v27 }
 0x2ae   : > { %v1322_v29 = vmax.f32 %v1289_v28, 0.0 }
 0x2b0   : > { %1354 = vst.msk [vmem:[%s1926_s29 + $0xf8] sm:$0xff] %vm635_vm1, %v1322_v29 }
 0x2b1 PF: > { %s19_s30 = sadd.s32 1, %s1597_s30  }
 0x2b2   : > { %p16_p4 = scmp.ge.s32.totalorder %s19_s30, 6  }
 0x2b4   :  { %18 = sbr.rel (!%p16_p4) target bundleno = 1 (0x1), region = 89 }

</bundles_post_ra>
